<compile_context>
chip_gen: v7x
topology: tpu7x:2x2x1
jax: 0.10.0
libtpu: 0.0.40
codegen_flags: <defaults>
</compile_context>

<pallas_src>
import functools

import jax
import jax.numpy as jnp
from jax.experimental import pallas as pl
from jax.experimental.pallas import tpu as pltpu


def _round_up(a, b):
    return (a + b - 1) // b * b


def _pick_hidden_tile(H, want):
    """Largest lane-aligned (multiple of 128) tile <= want that divides H."""
    if H % 128 != 0:
        return H  # fall back to the full hidden dim (block == full array dim)
    t = min(want, H)
    t = max(128, (t // 128) * 128)
    while H % t != 0:
        t -= 128
    return t


def _mlp_kernel(x_ref, w1_ref, w3_ref, w2_ref, o_ref, acc_ref):
    # x_ref: (tm, E)  w1_ref/w3_ref: (E, th)  w2_ref: (th, E)
    # o_ref: (tm, E)  acc_ref: (tm, E) f32 scratch (resident across h axis)
    h = pl.program_id(1)

    @pl.when(h == 0)
    def _():
        acc_ref[...] = jnp.zeros_like(acc_ref)

    x = x_ref[...]
    h1 = jnp.dot(x, w1_ref[...], preferred_element_type=jnp.float32)
    h3 = jnp.dot(x, w3_ref[...], preferred_element_type=jnp.float32)
    # SiLU(h1) = h1 * sigmoid(h1); exp + approx reciprocal run on the EUP slot.
    gate = h1 * pl.reciprocal(1.0 + jnp.exp(-h1), approx=True)
    gated = (gate * h3).astype(w2_ref.dtype)
    acc_ref[...] += jnp.dot(gated, w2_ref[...], preferred_element_type=jnp.float32)

    @pl.when(h == pl.num_programs(1) - 1)
    def _():
        o_ref[...] = acc_ref[...].astype(o_ref.dtype)


def prepare_mlp_params(w1, w2, w3, compute_dtype=jnp.bfloat16):
    """One-time param prep (NOT in the per-call path): transpose the PyTorch
    (out_features, in_features) weights to row-major (in, out) and cast to the
    MXU compute dtype."""
    w1_t = jnp.asarray(w1).T.astype(compute_dtype)  # (E, H)
    w2_t = jnp.asarray(w2).T.astype(compute_dtype)  # (H, E)
    w3_t = jnp.asarray(w3).T.astype(compute_dtype)  # (E, H)
    return w1_t, w2_t, w3_t


@functools.partial(jax.jit, static_argnames=("tm", "th"))
def mlp_forward(x, w1_t, w2_t, w3_t, *, tm=256, th=512):
    """x: [..., E]; w1_t/w3_t: [E, H]; w2_t: [H, E] (already prepared)."""
    orig_shape = x.shape
    E = orig_shape[-1]
    H = w1_t.shape[1]

    x2d = x.reshape(-1, E)
    M = x2d.shape[0]

    # Row tile: MXU-aligned, clamped to the (8-aligned) token count.
    tm_eff = min(tm, _round_up(M, 8))
    tm_eff = max(8, (tm_eff // 8) * 8)
    # Hidden tile: lane-aligned divisor of H.
    th_eff = _pick_hidden_tile(H, th)

    # Ragged token counts: zero-pad rows instead of asserting.
    M_pad = _round_up(M, tm_eff)
    if M_pad != M:
        x2d = jnp.pad(x2d, ((0, M_pad - M), (0, 0)))

    # Cast the activation to the weight compute dtype (bf16 by default).
    x2d = x2d.astype(w1_t.dtype)

    grid = (M_pad // tm_eff, H // th_eff)

    out = pl.pallas_call(
        _mlp_kernel,
        out_shape=jax.ShapeDtypeStruct((M_pad, E), x.dtype),
        grid_spec=pltpu.PrefetchScalarGridSpec(
            num_scalar_prefetch=0,
            grid=grid,
            in_specs=[
                pl.BlockSpec((tm_eff, E), lambda i, h: (i, 0)),   # x row tile
                pl.BlockSpec((E, th_eff), lambda i, h: (0, h)),   # W1^T chunk
                pl.BlockSpec((E, th_eff), lambda i, h: (0, h)),   # W3^T chunk
                pl.BlockSpec((th_eff, E), lambda i, h: (h, 0)),   # W2^T chunk
            ],
            out_specs=pl.BlockSpec((tm_eff, E), lambda i, h: (i, 0)),
            scratch_shapes=[pltpu.VMEM((tm_eff, E), jnp.float32)],
        ),
        compiler_params=pltpu.CompilerParams(
            dimension_semantics=("parallel", "arbitrary"),
        ),
    )(x2d, w1_t, w3_t, w2_t)

    if M_pad != M:
        out = out[:M]
    return out.reshape(orig_shape)


def _refact_hidden_dim(embed_dim, mult=4.0, multiple_of=256):
    hidden_dim = embed_dim * mult
    hidden_dim = int(2 * hidden_dim / 3)
    hidden_dim = multiple_of * ((hidden_dim + multiple_of - 1) // multiple_of)
    return hidden_dim


def _reference(x, w1, w2, w3, compute_dtype=jnp.float32):
    """Pure-JAX reference matching the kernel's compute dtype (f32 accumulation)."""
    cd = compute_dtype
    xc = x.astype(cd)
    h1 = jnp.dot(xc, w1.T.astype(cd), preferred_element_type=jnp.float32)
    h3 = jnp.dot(xc, w3.T.astype(cd), preferred_element_type=jnp.float32)
    gated = (jax.nn.silu(h1) * h3).astype(cd)
    y = jnp.dot(gated, w2.T.astype(cd), preferred_element_type=jnp.float32)
    return y.astype(x.dtype)


if __name__ == "__main__":
    embed_dim = 128
    hidden_dim = _refact_hidden_dim(embed_dim)  # -> 512
    batch, seq = 2, 8

    key = jax.random.PRNGKey(0)
    kx, k1, k2, k3 = jax.random.split(key, 4)
    x = jax.random.normal(kx, (batch, seq, embed_dim), dtype=jnp.float32)
    # PyTorch nn.Linear weight layout: (out_features, in_features)
    w1 = jax.random.normal(k1, (hidden_dim, embed_dim), dtype=jnp.float32) * 0.02
    w2 = jax.random.normal(k2, (embed_dim, hidden_dim), dtype=jnp.float32) * 0.02
    w3 = jax.random.normal(k3, (hidden_dim, embed_dim), dtype=jnp.float32) * 0.02

    # --- bf16-compute path (default / production config) -------------------
    w1_t, w2_t, w3_t = prepare_mlp_params(w1, w2, w3, compute_dtype=jnp.bfloat16)
    y = mlp_forward(x, w1_t, w2_t, w3_t, tm=256, th=256)  # th=256 -> 2 H chunks
    jax.block_until_ready(y)

    y_ref = _reference(x, w1, w2, w3, compute_dtype=jnp.bfloat16)
    assert y.shape == (batch, seq, embed_dim)
    assert jnp.allclose(y, y_ref, atol=1e-2, rtol=1e-2), float(
        jnp.max(jnp.abs(y - y_ref))
    )

    # --- f32-compute path + ragged token count (exercises zero-padding) ----
    x_ragged = jax.random.normal(kx, (batch, 5, embed_dim), dtype=jnp.float32)
    w1_f, w2_f, w3_f = prepare_mlp_params(w1, w2, w3, compute_dtype=jnp.float32)
    y2 = mlp_forward(x_ragged, w1_f, w2_f, w3_f, tm=256, th=256)
    jax.block_until_ready(y2)
    y2_ref = _reference(x_ragged, w1, w2, w3, compute_dtype=jnp.float32)
    assert y2.shape == (batch, 5, embed_dim)
    assert jnp.allclose(y2, y2_ref, atol=1e-2, rtol=1e-2), float(
        jnp.max(jnp.abs(y2 - y2_ref))
    )

    print("KERNEL_OK")
</pallas_src>

<mosaic_0001>
module attributes {stable_mosaic.version = 11 : i64} {
  func.func @_mlp_kernel(%arg0: i32, %arg1: i32, %arg2: memref<16x128xbf16, #tpu.memory_space<vmem>>, %arg3: memref<128x256xbf16, #tpu.memory_space<vmem>>, %arg4: memref<128x256xbf16, #tpu.memory_space<vmem>>, %arg5: memref<256x128xbf16, #tpu.memory_space<vmem>>, %arg6: memref<16x128xf32, #tpu.memory_space<vmem>>, %arg7: memref<16x128xf32, #tpu.memory_space<vmem>>) attributes {dimension_semantics = [#tpu.dimension_semantics<parallel>, #tpu.dimension_semantics<arbitrary>], iteration_bounds = array<i64: 1, 2>, scalar_prefetch = 0 : i64, scratch_operands = 1 : i64, tpu.core_type = #tpu.core_type<tc>, window_params = [{transform_indices = @transform_0, window_bounds = array<i64: 16, 128>}, {transform_indices = @transform_1, window_bounds = array<i64: 128, 256>}, {transform_indices = @transform_2, window_bounds = array<i64: 128, 256>}, {transform_indices = @transform_3, window_bounds = array<i64: 256, 128>}, {transform_indices = @transform_4, window_bounds = array<i64: 16, 128>}]} {
    %c0_i32 = arith.constant 0 : i32
    %0 = arith.cmpi eq, %arg1, %c0_i32 : i32
    %1 = arith.extui %0 : i1 to i32
    %c0_i32_0 = arith.constant 0 : i32
    %2 = arith.cmpi ne, %1, %c0_i32_0 : i32
    scf.if %2 {
      %cst_17 = arith.constant 0.000000e+00 : f32
      %25 = vector.broadcast %cst_17 : f32 to vector<16x128xf32>
      %c0_18 = arith.constant 0 : index
      %c0_19 = arith.constant 0 : index
      %26 = vector.load %arg7[%c0_18, %c0_19] : memref<16x128xf32, #tpu.memory_space<vmem>>, vector<16x128xf32>
      tpu.vector_store %arg7[%c0_18, %c0_19], %25 {strides = array<i32>} : memref<16x128xf32, #tpu.memory_space<vmem>>, vector<16x128xf32>,
    } else {
    }
    %c0 = arith.constant 0 : index
    %c0_1 = arith.constant 0 : index
    %3 = vector.load %arg2[%c0, %c0_1] : memref<16x128xbf16, #tpu.memory_space<vmem>>, vector<16x128xbf16>
    %c0_2 = arith.constant 0 : index
    %c0_3 = arith.constant 0 : index
    %4 = vector.load %arg3[%c0_2, %c0_3] : memref<128x256xbf16, #tpu.memory_space<vmem>>, vector<128x256xbf16>
    %cst = arith.constant dense<0.000000e+00> : vector<16x256xf32>
    %5 = tpu.matmul %3, %4, %cst {dimension_numbers = #tpu.dot_dimension_numbers<[1], [0], [0], [1], [0, 0, 1, 1], [], []>} : vector<16x128xbf16>, vector<128x256xbf16>, vector<16x256xf32> -> vector<16x256xf32>
    %c0_4 = arith.constant 0 : index
    %c0_5 = arith.constant 0 : index
    %6 = vector.load %arg4[%c0_4, %c0_5] : memref<128x256xbf16, #tpu.memory_space<vmem>>, vector<128x256xbf16>
    %cst_6 = arith.constant dense<0.000000e+00> : vector<16x256xf32>
    %7 = tpu.matmul %3, %6, %cst_6 {dimension_numbers = #tpu.dot_dimension_numbers<[1], [0], [0], [1], [0, 0, 1, 1], [], []>} : vector<16x128xbf16>, vector<128x256xbf16>, vector<16x256xf32> -> vector<16x256xf32>
    %cst_7 = arith.constant 0.000000e+00 : f32
    %8 = vector.broadcast %cst_7 : f32 to vector<16x256xf32>
    %9 = arith.subf %8, %5 : vector<16x256xf32>
    %10 = math.exp %9 : vector<16x256xf32>
    %cst_8 = arith.constant 1.000000e+00 : f32
    %11 = vector.broadcast %cst_8 : f32 to vector<16x256xf32>
    %12 = arith.addf %11, %10 : vector<16x256xf32>
    %13 = tpu.reciprocal %12 {approx = true} : vector<16x256xf32> -> vector<16x256xf32>
    %14 = arith.mulf %5, %13 : vector<16x256xf32>
    %15 = arith.mulf %14, %7 : vector<16x256xf32>
    %16 = arith.truncf %15 : vector<16x256xf32> to vector<16x256xbf16>
    %c0_9 = arith.constant 0 : index
    %c0_10 = arith.constant 0 : index
    %17 = vector.load %arg7[%c0_9, %c0_10] : memref<16x128xf32, #tpu.memory_space<vmem>>, vector<16x128xf32>
    %c0_11 = arith.constant 0 : index
    %c0_12 = arith.constant 0 : index
    %18 = vector.load %arg5[%c0_11, %c0_12] : memref<256x128xbf16, #tpu.memory_space<vmem>>, vector<256x128xbf16>
    %cst_13 = arith.constant dense<0.000000e+00> : vector<16x128xf32>
    %19 = tpu.matmul %16, %18, %cst_13 {dimension_numbers = #tpu.dot_dimension_numbers<[1], [0], [0], [1], [0, 0, 1, 1], [], []>} : vector<16x256xbf16>, vector<256x128xbf16>, vector<16x128xf32> -> vector<16x128xf32>
    %20 = arith.addf %17, %19 : vector<16x128xf32>
    %c0_14 = arith.constant 0 : index
    %c0_15 = arith.constant 0 : index
    %21 = vector.load %arg7[%c0_14, %c0_15] : memref<16x128xf32, #tpu.memory_space<vmem>>, vector<16x128xf32>
    tpu.vector_store %arg7[%c0_14, %c0_15], %20 {strides = array<i32>} : memref<16x128xf32, #tpu.memory_space<vmem>>, vector<16x128xf32>,
    %c1_i32 = arith.constant 1 : i32
    %22 = arith.cmpi eq, %arg1, %c1_i32 : i32
    %23 = arith.extui %22 : i1 to i32
    %c0_i32_16 = arith.constant 0 : i32
    %24 = arith.cmpi ne, %23, %c0_i32_16 : i32
    scf.if %24 {
      %c0_17 = arith.constant 0 : index
      %c0_18 = arith.constant 0 : index
      %25 = vector.load %arg7[%c0_17, %c0_18] : memref<16x128xf32, #tpu.memory_space<vmem>>, vector<16x128xf32>
      %c0_19 = arith.constant 0 : index
      %c0_20 = arith.constant 0 : index
      %26 = vector.load %arg6[%c0_19, %c0_20] : memref<16x128xf32, #tpu.memory_space<vmem>>, vector<16x128xf32>
      tpu.vector_store %arg6[%c0_19, %c0_20], %25 {strides = array<i32>} : memref<16x128xf32, #tpu.memory_space<vmem>>, vector<16x128xf32>,
    } else {
    }
    return
  }
  func.func @transform_0(%arg0: i32, %arg1: i32) -> (i32, i32) {
    %c0_i32 = arith.constant 0 : i32
    %c0_i32_0 = arith.constant 0 : i32
    return %arg0, %c0_i32 : i32, i32
  }
  func.func @transform_1(%arg0: i32, %arg1: i32) -> (i32, i32) {
    %c0_i32 = arith.constant 0 : i32
    %c0_i32_0 = arith.constant 0 : i32
    return %c0_i32, %arg1 : i32, i32
  }
  func.func @transform_2(%arg0: i32, %arg1: i32) -> (i32, i32) {
    %c0_i32 = arith.constant 0 : i32
    %c0_i32_0 = arith.constant 0 : i32
    return %c0_i32, %arg1 : i32, i32
  }
  func.func @transform_3(%arg0: i32, %arg1: i32) -> (i32, i32) {
    %c0_i32 = arith.constant 0 : i32
    %c0_i32_0 = arith.constant 0 : i32
    return %arg1, %c0_i32 : i32, i32
  }
  func.func @transform_4(%arg0: i32, %arg1: i32) -> (i32, i32) {
    %c0_i32 = arith.constant 0 : i32
    %c0_i32_0 = arith.constant 0 : i32
    return %arg0, %c0_i32 : i32, i32
  }
}

</mosaic_0001>

<bundles_post_ra>
// kernel: mlp_forward.1
= control target key start
LH: loop header
LB: loop body
LE: loop exit
PB: predicated region body
PF: predicated region fallthrough
CT: control target
= control target key end

     0   :  { %s1732_s0 = inlined_call_operand.vmem [shape: bf16[16,128], index: 0, kind: input, shape index: {}]   ;;  %s1733_s1 = inlined_call_operand.hbm [shape: bf16[128,512], index: 1, kind: input, shape index: {}]   ;;  %s1734_s2 = inlined_call_operand.hbm [shape: bf16[128,512], index: 2, kind: input, shape index: {}]   ;;  %s1735_s3 = inlined_call_operand.hbm [shape: bf16[512,128], index: 3, kind: input, shape index: {}]   ;;  %s1736_s4 = inlined_call_operand.hbm [shape: f32[16,128], index: 4, kind: output, shape index: {}]  }
   0x1   :  { %1741 = sst [smem:[#allocation13_spill]] %s1733_s1 }
   0x2   :  { %9 = vsyncpa [#allocation4], 0 }
   0x3   :  { %11 = vsyncpa [#allocation4 + $0x1], 0 }
   0x4   :  { %12 = vsyncpa [#allocation7], 0 }
   0x5   :  { %14 = vsyncpa [#allocation7 + $0x1], 0 }
   0x6   :  { %15 = vsyncpa [#allocation5], 0  ;;  %s1434_s15 = smov 0   ;;  %s1436_s16 = smov 0  }
   0x7   :  { %s1438_s17 = smov 0   ;;  %s1440_s18 = smov 0  }
   0x8   :  { %s1442_s19 = smov 0   ;;  %s1444_s20 = smov 0  }
   0x9 LB: > { %s1463_s21 = sadd.s32 4294967295, %s1394_s20   ;;  %s30_s22 = sadd.s32 1, %s1390_s19  ;;  %s1394_s20 = sphi %s1444_s20, %s21_s20   ;;  %s1390_s19 = sphi %s1442_s19, %s1758_s19   ;;  %s1386_s18 = sphi %s1440_s18, %s1757_s18   ;;  %s1382_s17 = sphi %s1438_s17, %s1756_s17   ;;  %s1378_s16 = sphi %s1436_s16, %s1755_s16   ;;  %s1374_s15 = sphi %s1434_s15, %s1754_s15  }
   0xa   : > { %p31_p0 = scmp.ge.s32.totalorder %s30_s22, 2  ;;  %s66_s23 = sadd.s32 1, %s1382_s17 }
   0xb   : > { %p73_p1 = scmp.ne.s32.totalorder %s1382_s17, %s1378_s16  ;;  %p74_p2 = scmp.eq.s32.totalorder %s1394_s20, 0 }
   0xc   : > { %s1760_s22 = smov (%p31_p0, %s30_s22), 0  ;;  %p79_p4 = scmp.ne.s32.totalorder %s1378_s16, %s1374_s15 }
   0xd   : > { %p75_p3 = por %p74_p2, %p73_p1  ;;  %s63_s24 = ssub.s32 %s1390_s19, %s1760_s22 }
   0xe   : > { %p80_p5 = scmp.eq.s32.totalorder %s1463_s21, 0  ;;  %p64_p6 = scmp.eq.s32.totalorder %s63_s24, 0 }
   0xf   : > { %p1078_p8 = scmp.lt.s32.totalorder %s1394_s20, 2  ;;  %s190_s27 = sand.u32 1, %s1382_s17  }
  0x10   : > { %p1476_p7 = por %p80_p5, %p79_p4  ;;  %s1033_s28 = sshll.u32 %s1390_s19, 7 }
  0x11   : > { %s1482_s26 = scalar_select %p64_p6, %s1382_s17, %s66_s23  }
  0x12   : > { %s1742_s25 = scalar_select %p1476_p7, 1, 0 }
  0x13   : > { %s1488_s29 = sshll.u32 %s190_s27, 7  ;;  %p1490_p9 = pnand %p1078_p8, %p75_p3 }
  0x14   : > { %s211_s5 = sand.u32 1, %s1394_s20   ;;  %s1500_s8 = scalar_lea.hbm %s1734_s2, %s1033_s28 }
  0x15   : > { %s215_s9 = scalar_lea.vmem [#allocation6], %s1488_s29  ;;  %s1507_s11 = scalar_lea.sflag [#allocation7], %s211_s5 }
  0x16   : > { %s222_s10 = sshll.u32 %s215_s9, 4  ;;  %s1220_s12 = scalar_lea.hbm %s1500_s8, 2048  ;;  %s1504_s10 = int_to_ptr.vmem [resolvable:$true] %s222_s10 }
  0x17   : > { %p1221_p12 = scmp.ne.s32.totalorder %s1500_s8, %s1220_s12  ;;  %p1513_p13 = pneg %p1490_p9 }
  0x18   : > { %s1225_s23 = scalar_lea.hbm %s1734_s2, 4096  ;;  %p1226_p2 = scmp.lt.u32.totalorder %s1500_s8, %s1734_s2 }
  0x19   : > { %p1223_p0 = pnand %p1513_p13, %p1221_p12  ;;  %p1227_p3 = scmp.lt.u32.totalorder %s1225_s23, %s1220_s12 }
  0x1a   : > { %p1229_p5 = scmp.lt.u32.totalorder %s1220_s12, %s1500_s8 }
  0x1b   : > { %p1224_p1 = pneg %p1223_p0  ;;  %p1228_p4 = por %p1227_p3, %p1226_p2 }
  0x1d   : > { %p1230_p6 = por %p1229_p5, %p1228_p4 }
  0x1f   : > { %p1231_p8 = pnand %p1230_p6, %p1224_p1 }
  0x21   : > { %1234 = shalt.err (!%p1231_p8)
}
  0x22   : > { %s1235_s5 = scalar_lea.vmem %s1504_s10, 2048  ;;  %s1396_s7 = smov [#allocation6]  }
  0x23   : > { %p1236_p12 = scmp.ne.s32.totalorder %s1504_s10, %s1235_s5  ;;  %s1240_s9 = sshll.u32 %s1396_s7, 4  ;;  %s1241_s9 = int_to_ptr.vmem [resolvable:$false] %s1240_s9 }
  0x24   : > { %s1242_s14 = scalar_lea.vmem %s1241_s9, 4096  ;;  %p1243_p11 = scmp.lt.s32.totalorder %s1504_s10, %s1241_s9 }
  0x25   : > { %p1238_p0 = pnand %p1236_p12, %p1513_p13  ;;  %p1244_p7 = scmp.lt.s32.totalorder %s1242_s14, %s1235_s5 }
  0x27   : > { %p1239_p10 = pneg %p1238_p0  ;;  %p1245_p2 = por %p1244_p7, %p1243_p11 }
  0x29   : > { %p1246_p3 = pnand %p1245_p2, %p1239_p10 }
  0x2b   : > { %1249 = shalt.err (!%p1246_p3)
}
  0x2c   : > { %s1738_s12 = smov 256   ;;  %s1739_s15 = smov 128  }
  0x2d   : > { %s1740_s23 = smov 8   ;;  %p1745_p7 = scmp.lt.s32.totalorder %s1394_s20, 3 }
  0x2e   : > { %1074 = dma.hbm_to_vmem [thread:$0]  (!%p1490_p9), %s1500_s8, 2048, %s1504_s10, %s1507_s11, %s1738_s12, %s1739_s15, %s1740_s23  }
  0x2f   : > { %p1746_p10 = scmp.ge.s32.totalorder %s1394_s20, 1  ;;  %s1748_s1 = sld [smem:[#allocation13_spill]] }
  0x30   : > { %s194_s9 = scalar_lea.vmem [#allocation3], %s1488_s29  ;;  %s1035_s8 = sshll.u32 %s1390_s19, 11 }
  0x31   : > { %p1544_p11 = pnand %p1746_p10, %p1745_p7  ;;  %s201_s14 = sshll.u32 %s194_s9, 4  ;;  %s1556_s14 = int_to_ptr.vmem [resolvable:$true] %s201_s14 }
  0x32   : > { %s1561_s10 = scalar_lea.sflag [#allocation4], %s190_s27 }
  0x33   : > { %s1747_s24 = scalar_select %p1544_p11, 1, 0 }
  0x35   : > { %s1553_s7 = scalar_lea.hbm %s1748_s1, %s1033_s28  ;;  %s1255_s5 = scalar_lea.hbm %s1748_s1, 4096 }
  0x36   : > { %s1250_s12 = scalar_lea.hbm %s1553_s7, 2048  ;;  %p1256_p6 = scmp.lt.u32.totalorder %s1553_s7, %s1748_s1 }
  0x37   : > { %p1251_p1 = scmp.ne.s32.totalorder %s1553_s7, %s1250_s12  ;;  %p1257_p8 = scmp.lt.u32.totalorder %s1255_s5, %s1250_s12 }
  0x38   : > { %p1259_p0 = scmp.lt.u32.totalorder %s1250_s12, %s1553_s7 }
  0x39   : > { %p1253_p4 = pnand %p1251_p1, %p1513_p13  ;;  %p1258_p12 = por %p1257_p8, %p1256_p6 }
  0x3b   : > { %p1254_p5 = pneg %p1253_p4  ;;  %p1260_p2 = por %p1259_p0, %p1258_p12 }
  0x3d   : > { %p1261_p3 = pnand %p1260_p2, %p1254_p5 }
  0x3f   : > { %1264 = shalt.err (!%p1261_p3)
}
  0x40   : > { %s1265_s27 = scalar_lea.vmem %s1556_s14, 2048  ;;  %s1400_s9 = smov [#allocation3]  }
  0x41   : > { %p1266_p7 = scmp.ne.s32.totalorder %s1556_s14, %s1265_s27  ;;  %s1270_s6 = sshll.u32 %s1400_s9, 4  ;;  %s1271_s6 = int_to_ptr.vmem [resolvable:$false] %s1270_s6 }
  0x42   : > { %s1272_s15 = scalar_lea.vmem %s1271_s6, 4096  ;;  %p1273_p4 = scmp.lt.s32.totalorder %s1556_s14, %s1271_s6 }
  0x43   : > { %p1268_p10 = pnand %p1266_p7, %p1513_p13  ;;  %p1274_p11 = scmp.lt.s32.totalorder %s1272_s15, %s1265_s27 }
  0x45   : > { %p1269_p1 = pneg %p1268_p10  ;;  %p1275_p6 = por %p1274_p11, %p1273_p4 }
  0x47   : > { %p1276_p8 = pnand %p1275_p6, %p1269_p1 }
  0x49   : > { %1279 = shalt.err (!%p1276_p8)
}
  0x4a   : > { %s1749_s12 = smov 8   ;;  %s1750_s23 = smov 128  }
  0x4b   : > { %s1751_s28 = smov 256   ;;  %s1593_s27 = scalar_lea.hbm %s1735_s3, %s1035_s8 }
  0x4c   : > { %1071 = dma.hbm_to_vmem [thread:$0]  (!%p1490_p9), %s1553_s7, 2048, %s1556_s14, %s1561_s10, %s1751_s28, %s1750_s23, %s1749_s12  }
  0x4d   : > { %s236_s6 = scalar_lea.vmem [#allocation8], %s1488_s29  ;;  %s1280_s1 = scalar_lea.hbm %s1593_s27, 2048 }
  0x4e   : > { %s243_s15 = sshll.u32 %s236_s6, 4  ;;  %p1281_p11 = scmp.ne.s32.totalorder %s1593_s27, %s1280_s1  ;;  %s1596_s15 = int_to_ptr.vmem [resolvable:$true] %s243_s15 }
  0x4f   : > { %s1285_s10 = scalar_lea.hbm %s1735_s3, 4096  ;;  %p1286_p0 = scmp.lt.u32.totalorder %s1593_s27, %s1735_s3 }
  0x50   : > { %p1283_p5 = pnand %p1281_p11, %p1513_p13  ;;  %p1287_p2 = scmp.lt.u32.totalorder %s1285_s10, %s1280_s1 }
  0x51   : > { %p1289_p7 = scmp.lt.u32.totalorder %s1280_s1, %s1593_s27 }
  0x52   : > { %p1284_p12 = pneg %p1283_p5  ;;  %p1288_p3 = por %p1287_p2, %p1286_p0 }
  0x54   : > { %p1290_p10 = por %p1289_p7, %p1288_p3 }
  0x56   : > { %p1291_p1 = pnand %p1290_p10, %p1284_p12 }
  0x58   : > { %1294 = shalt.err (!%p1291_p1)
}
  0x59   : > { %s1295_s29 = scalar_lea.vmem %s1596_s15, 2048  ;;  %s1401_s23 = smov [#allocation8]  }
  0x5a   : > { %p1296_p4 = scmp.ne.s32.totalorder %s1596_s15, %s1295_s29  ;;  %s1300_s28 = sshll.u32 %s1401_s23, 4  ;;  %s1301_s28 = int_to_ptr.vmem [resolvable:$false] %s1300_s28 }
  0x5b   : > { %s1302_s5 = scalar_lea.vmem %s1301_s28, 4096  ;;  %p1303_p11 = scmp.lt.s32.totalorder %s1596_s15, %s1301_s28 }
  0x5c   : > { %p1298_p6 = pnand %p1296_p4, %p1513_p13  ;;  %p1304_p5 = scmp.lt.s32.totalorder %s1302_s5, %s1295_s29 }
  0x5e   : > { %p1299_p8 = pneg %p1298_p6  ;;  %p1305_p0 = por %p1304_p5, %p1303_p11 }
  0x60   : > { %p1306_p2 = pnand %p1305_p0, %p1299_p8 }
  0x62   : > { %1309 = shalt.err (!%p1306_p2)
}
  0x63   : > { %s1402_s1 = smov 64   ;;  %s1403_s9 = smov 4  }
  0x64   : > { %1077 = dma.hbm_to_vmem [thread:$0]  (!%p1490_p9), %s1593_s27, 2048, %s1596_s15, %s1507_s11, %s1402_s1, %s1402_s1, %s1403_s9  }
  0x65   : > { %p1752_p13 = scmp.ne.s32.totalorder %s1747_s24, 0 }
  0x66   : > { %s257_s13 = sand.u32 (!%p1752_p13), 1, %s1378_s16   ;;  %p1753_p12 = scmp.ne.s32.totalorder (!%p1752_p13), %s1742_s25, 0 }
  0x67   : > { %255 = sbr.rel (%p1752_p13) target bundleno = 661 (0x295), region = 36  ;;  %s975_s6 = sshll.u32 (!%p1752_p13), %s257_s13, 7 }
  0x68   : > { %s258_s7 = scalar_lea.sflag (!%p1752_p13), [#allocation4], %s257_s13  ;;  %s1623_s14 = scalar_lea.vmem (!%p1752_p13), [#allocation3], %s975_s6 }
  0x6e   : > { %1361 = dma.done.wait (%p1753_p12), %s258_s7, 2048  }
  0x6f   : > { %1363 = vsyncadd (%p1753_p12), %s258_s7, 4294965248  ;;  %s266_s10 = sand.u32 1, %s1463_s21   ;;  %s1630_s11 = scalar_lea.vmem [#allocation6], %s975_s6 }
  0x70   : > { %s267_s30 = scalar_lea.sflag [#allocation7], %s266_s10 }
  0x71   : > { %1365 = dma.done.wait (%p1753_p12), %s267_s30, 4096  }
  0x72   : > { %1367 = vsyncadd (%p1753_p12), %s267_s30, 4294963200  ;;  %s1636_s24 = scalar_lea.vmem [#allocation8], %s975_s6  ;;  %p978_p9 = scmp.ne.s32.totalorder %s1386_s18, 0 }
  0x73   : > { %v1404_v0 = vmov (!%p978_p9), 0.0  }
  0x74   : > { %328 = sbr.rel (%p978_p9) target bundleno = 123 (0x7b), region = 52  ;;  %329 = vst [vmem:[#allocation2] sm:$0xff] (!%p978_p9), %v1404_v0  ;;  %330 = vst [vmem:[#allocation2 + $0x8] sm:$0xff] (!%p978_p9), %v1404_v0 }
  0x7b PF: > { %v1139_v1 = vld [vmem:[%s1623_s14 + $0x4] ss:$8 sps:$4 sm:$0xff]   ;;  %v1141_v2 = vld [vmem:[%s1623_s14] ss:$8 sps:$4 sm:$0xff]   ;;  %v1405_v3 = vmov 0   ;;  %v1192_v39 = vld [vmem:[%s1636_s24 + $0x50] sm:$0xff]  }
  0x7c   : > { %467 = vmatprep.mubr.bf16.mxu0 %v1405_v3  ;;  %606 = vmatprep.mubr.bf16.mxu1 %v1405_v3  ;;  %v1142_v4 = vld [vmem:[%s1623_s14 + $0x14] ss:$8 sps:$4 sm:$0xff]   ;;  %v1144_v5 = vld [vmem:[%s1623_s14 + $0x10] ss:$8 sps:$4 sm:$0xff]   ;;  %v1145_v6 = vld [vmem:[%s1623_s14 + $0x24] ss:$8 sps:$4 sm:$0xff]  }
  0x7d   : > { %435 = vmatprep.subr.bf16.mxu0 %v1139_v1  ;;  %v1147_v7 = vld [vmem:[%s1623_s14 + $0x20] ss:$8 sps:$4 sm:$0xff]   ;;  %v1148_v8 = vld [vmem:[%s1623_s14 + $0x34] ss:$8 sps:$4 sm:$0xff]   ;;  %v1160_v9 = vld [vmem:[%s1630_s11 + $0x4] ss:$8 sps:$4 sm:$0xff]  }
  0x7e   : > { %436 = vmatpush1.bf16.msra.mxu0 %v1141_v2  ;;  %v1150_v10 = vld [vmem:[%s1623_s14 + $0x30] ss:$8 sps:$4 sm:$0xff]   ;;  %v1151_v11 = vld [vmem:[%s1623_s14 + $0x44] ss:$8 sps:$4 sm:$0xff]   ;;  %v1164_v12 = vld [vmem:[%s1630_s11] ss:$8 sps:$4 sm:$0xff]   ;;  %574 = vmatprep.subr.bf16.mxu1 %v1160_v9 }
  0x7f   : > { %437 = vmatprep.subr.bf16.mxu0 %v1142_v4  ;;  %v1166_v13 = vld [vmem:[%s1630_s11 + $0x14] ss:$8 sps:$4 sm:$0xff]   ;;  %575 = vmatpush1.bf16.msra.mxu1 %v1164_v12  ;;  %v1169_v14 = vld [vmem:[%s1630_s11 + $0x10] ss:$8 sps:$4 sm:$0xff]   ;;  %v1153_v15 = vld [vmem:[%s1623_s14 + $0x40] ss:$8 sps:$4 sm:$0xff]  }
  0x80   : > { %576 = vmatprep.subr.bf16.mxu1 %v1166_v13  ;;  %v1170_v16 = vld [vmem:[%s1630_s11 + $0x24] ss:$8 sps:$4 sm:$0xff]   ;;  %v1154_v17 = vld [vmem:[%s1623_s14 + $0x54] ss:$8 sps:$4 sm:$0xff]   ;;  %v1172_v18 = vld [vmem:[%s1630_s11 + $0x20] ss:$8 sps:$4 sm:$0xff]  }
  0x81   : > { %v1173_v19 = vld [vmem:[%s1630_s11 + $0x34] ss:$8 sps:$4 sm:$0xff]   ;;  %v1156_v20 = vld [vmem:[%s1623_s14 + $0x50] ss:$8 sps:$4 sm:$0xff]   ;;  %v1157_v21 = vld [vmem:[%s1623_s14 + $0x64] ss:$8 sps:$4 sm:$0xff]  }
  0x82   : > { %438 = vmatpush1.bf16.msra.mxu0 %v1144_v5  ;;  %v1159_v22 = vld [vmem:[%s1623_s14 + $0x60] ss:$8 sps:$4 sm:$0xff]   ;;  %v1175_v23 = vld [vmem:[%s1630_s11 + $0x30] ss:$8 sps:$4 sm:$0xff]   ;;  %v1162_v24 = vld [vmem:[%s1623_s14 + $0x74] ss:$8 sps:$4 sm:$0xff]  }
  0x83   : > { %439 = vmatprep.subr.bf16.mxu0 %v1145_v6  ;;  %577 = vmatpush1.bf16.msra.mxu1 %v1169_v14  ;;  %v1176_v25 = vld [vmem:[%s1630_s11 + $0x44] ss:$8 sps:$4 sm:$0xff]   ;;  %v1178_v26 = vld [vmem:[%s1630_s11 + $0x40] ss:$8 sps:$4 sm:$0xff]   ;;  %v1179_v27 = vld [vmem:[%s1630_s11 + $0x54] ss:$8 sps:$4 sm:$0xff]  }
  0x84   : > { %578 = vmatprep.subr.bf16.mxu1 %v1170_v16  ;;  %v1165_v28 = vld [vmem:[%s1623_s14 + $0x70] ss:$8 sps:$4 sm:$0xff]   ;;  %v1168_v30 = vld [vmem:[%s1732_s0] sm:$0xff]   ;;  %v1185_v33 = vld [vmem:[%s1630_s11 + $0x74] ss:$8 sps:$4 sm:$0xff]   ;;  %p1028_p3 = scmp.ne.s32.totalorder %s1386_s18, 1 }
  0x85   : > { %v1181_v29 = vld [vmem:[%s1630_s11 + $0x50] ss:$8 sps:$4 sm:$0xff]   ;;  %v1182_v31 = vld [vmem:[%s1630_s11 + $0x64] ss:$8 sps:$4 sm:$0xff]   ;;  %v1184_v32 = vld [vmem:[%s1630_s11 + $0x60] ss:$8 sps:$4 sm:$0xff]  }
  0x86   : > { %440 = vmatpush1.bf16.msra.mxu0 %v1147_v7  ;;  %v1187_v34 = vld [vmem:[%s1630_s11 + $0x70] ss:$8 sps:$4 sm:$0xff]   ;;  %v1188_v35 = vld [vmem:[%s1636_s24 + $0x40] sm:$0xff]   ;;  %v1190_v37 = vld [vmem:[%s1636_s24 + $0x48] sm:$0xff]  }
  0x87   : > { %441 = vmatprep.subr.bf16.mxu0 %v1148_v8  ;;  %579 = vmatpush1.bf16.msra.mxu1 %v1172_v18  ;;  %v1189_v36 = vld [vmem:[%s1636_s24] sm:$0xff]   ;;  %v1191_v38 = vld [vmem:[%s1636_s24 + $0x8] sm:$0xff]   ;;  %v1193_v40 = vld [vmem:[%s1636_s24 + $0x10] sm:$0xff]  }
  0x88   : > { %580 = vmatprep.subr.bf16.mxu1 %v1173_v19  ;;  %v1194_v41 = vld [vmem:[%s1636_s24 + $0x58] sm:$0xff]   ;;  %v1196_v43 = vld [vmem:[%s1636_s24 + $0x60] sm:$0xff]   ;;  %v1198_v45 = vld [vmem:[%s1636_s24 + $0x68] sm:$0xff]  }
  0x89   : > { %v1195_v42 = vld [vmem:[%s1636_s24 + $0x18] sm:$0xff]   ;;  %v1197_v44 = vld [vmem:[%s1636_s24 + $0x20] sm:$0xff]   ;;  %v1199_v46 = vld [vmem:[%s1636_s24 + $0x28] sm:$0xff]  }
  0x8a   : > { %442 = vmatpush1.bf16.msra.mxu0 %v1150_v10  ;;  %v1200_v47 = vld [vmem:[%s1636_s24 + $0x70] sm:$0xff]   ;;  %v1202_v49 = vld [vmem:[%s1636_s24 + $0x78] sm:$0xff]  }
  0x8b   : > { %443 = vmatprep.subr.bf16.mxu0 %v1151_v11  ;;  %581 = vmatpush1.bf16.msra.mxu1 %v1175_v23  ;;  %v1201_v48 = vld [vmem:[%s1636_s24 + $0x30] sm:$0xff]   ;;  %v1203_v50 = vld [vmem:[%s1636_s24 + $0x38] sm:$0xff]  }
  0x8c   : > { %582 = vmatprep.subr.bf16.mxu1 %v1176_v25 }
  0x8e   : > { %444 = vmatpush1.bf16.msra.mxu0 %v1153_v15 }
  0x8f   : > { %445 = vmatprep.subr.bf16.mxu0 %v1154_v17  ;;  %583 = vmatpush1.bf16.msra.mxu1 %v1178_v26  ;;  %v647_v26 = vld [vmem:[#allocation2] sm:$0xff] }
  0x90   : > { %584 = vmatprep.subr.bf16.mxu1 %v1179_v27 }
  0x92   : > { %446 = vmatpush1.bf16.msra.mxu0 %v1156_v20 }
  0x93   : > { %447 = vmatprep.subr.bf16.mxu0 %v1157_v21  ;;  %585 = vmatpush1.bf16.msra.mxu1 %v1181_v29 }
  0x94   : > { %586 = vmatprep.subr.bf16.mxu1 %v1182_v31 }
  0x96   : > { %448 = vmatpush1.bf16.msra.mxu0 %v1159_v22 }
  0x97   : > { %449 = vmatprep.subr.bf16.mxu0 %v1162_v24  ;;  %587 = vmatpush1.bf16.msra.mxu1 %v1184_v32 }
  0x98   : > { %588 = vmatprep.subr.bf16.mxu1 %v1185_v33 }
  0x9a   : > { %450 = vmatpush1.bf16.msra.mxu0 %v1165_v28 }
  0x9b   : > { %589 = vmatpush1.bf16.msra.mxu1 %v1187_v34  ;;  %1036 = vmatprep.subr.bf16.mxu0 %v1188_v35 }
  0x9d   : > { %468 = vmatmul.mubr.bf16.vlgmr.msra.gmra.mrb[0].mxu0 %v1168_v30 }
  0x9e   : > { %607 = vmatmul.mubr.bf16.vlgmr.msra.gmra.mrb[0].mxu1 %v1168_v30  ;;  %1037 = vmatpush3.bf16.msra.mxu0 %v1189_v36  ;;  %v648_v30 = vld [vmem:[#allocation2 + $0x8] sm:$0xff] }
  0x9f   : > { %1038 = vmatprep.subr.bf16.mxu0 %v1190_v37 }
  0xa2   : > { %1039 = vmatpush3.bf16.msra.mxu0 %v1191_v38 }
  0xa3   : > { %1040 = vmatprep.subr.bf16.mxu0 %v1192_v39 }
  0xa6   : > { %1041 = vmatpush3.bf16.msra.mxu0 %v1193_v40 }
  0xa7   : > { %1042 = vmatprep.subr.bf16.mxu0 %v1194_v41 }
  0xaa   : > { %1043 = vmatpush3.bf16.msra.mxu0 %v1195_v42 }
  0xab   : > { %1044 = vmatprep.subr.bf16.mxu0 %v1196_v43 }
  0xae   : > { %1045 = vmatpush3.bf16.msra.mxu0 %v1197_v44 }
  0xaf   : > { %1046 = vmatprep.subr.bf16.mxu0 %v1198_v45 }
  0xb2   : > { %1047 = vmatpush3.bf16.msra.mxu0 %v1199_v46 }
  0xb3   : > { %1048 = vmatprep.subr.bf16.mxu0 %v1200_v47 }
  0xb6   : > { %1049 = vmatpush3.bf16.msra.mxu0 %v1201_v48 }
  0xb7   : > { %1050 = vmatprep.subr.bf16.mxu0 %v1202_v49 }
  0xba   : > { %1051 = vmatpush3.bf16.msra.mxu0 %v1203_v50 }
 0x170   : > { %v469_v51 = vpop.f32.mrb[0].mxu0 }
 0x171   : > { %v617_v52 = vsub.f32 0.0, %v469_v51  ;;  %v471_v53 = vpop.f32.mrb[1].mxu0  ;;  %v608_v63 = vpop.f32.mrb[0].mxu1 }
 0x172   : > { %v618_v54 = vsub.f32 0.0, %v471_v53  ;;  %v473_v55 = vpop.f32.mrb[2].mxu0  ;;  %v610_v0 = vpop.f32.mrb[1].mxu1 }
 0x173   : > { %v621_v56 = vmul.f32 1.442695, %v617_v52  ;;  %v619_v57 = vsub.f32 0.0, %v473_v55  ;;  %v475_v58 = vpop.f32.mrb[3].mxu0  ;;  %v612_v1 = vpop.f32.mrb[2].mxu1 }
 0x174   : > { %v623_v59 = vmul.f32 1.442695, %v618_v54  ;;  %v620_v60 = vsub.f32 0.0, %v475_v58  ;;  %v614_v2 = vpop.f32.mrb[3].mxu1 }
 0x175   : > { %1204 = vpow2.f32 %v621_v56  ;;  %v625_v61 = vmul.f32 1.442695, %v619_v57 }
 0x176   : > { %1206 = vpow2.f32 %v623_v59  ;;  %v627_v62 = vmul.f32 1.442695, %v620_v60 }
 0x177   : > { %1208 = vpow2.f32 %v625_v61 }
 0x178   : > { %1210 = vpow2.f32 %v627_v62 }
 0x17f   : > { %v1205_v3 = vpop.eup %1204 }
 0x180   : > { %v1207_v4 = vpop.eup %1206  ;;  %v629_v5 = vadd.f32 1.0, %v1205_v3 }
 0x181   : > { %v1209_v6 = vpop.eup %1208  ;;  %v630_v7 = vadd.f32 1.0, %v1207_v4 }
 0x182   : > { %v1211_v8 = vpop.eup %1210  ;;  %1212 = vrcp.f32 %v629_v5  ;;  %v631_v9 = vadd.f32 1.0, %v1209_v6 }
 0x183   : > { %1214 = vrcp.f32 %v630_v7  ;;  %v632_v10 = vadd.f32 1.0, %v1211_v8 }
 0x184   : > { %1216 = vrcp.f32 %v631_v9 }
 0x185   : > { %1218 = vrcp.f32 %v632_v10 }
 0x18c   : > { %v1213_v11 = vpop.eup %1212 }
 0x18d   : > { %v1215_v12 = vpop.eup %1214  ;;  %v637_v13 = vmul.f32 %v1213_v11, %v469_v51 }
 0x18e   : > { %v1217_v14 = vpop.eup %1216  ;;  %v638_v15 = vmul.f32 %v1215_v12, %v471_v53 }
 0x18f   : > { %v1219_v16 = vpop.eup %1218  ;;  %v639_v17 = vmul.f32 %v1217_v14, %v473_v55  ;;  %v641_v18 = vmul.f32 %v637_v13, %v608_v63 }
 0x190   : > { %v640_v19 = vmul.f32 %v1219_v16, %v475_v58  ;;  %v642_v20 = vmul.f32 %v638_v15, %v610_v0 }
 0x191   : > { %v643_v21 = vmul.f32 %v639_v17, %v612_v1 }
 0x192   : > { %v644_v22 = vmul.f32 %v640_v19, %v614_v2 }
 0x193   : > { %v645_v23 = vpack.c.bf16 %v643_v21, %v641_v18 }
 0x194   : > { %v646_v24 = vpack.c.bf16 %v644_v22, %v642_v20 }
 0x196   : > { %809 = vmatprep.mubr.bf16.mxu0 %v646_v24 }
 0x197   : > { %810 = vmatmul.mubr.bf16.vlgmr.msra.gmra.mrb[4].mxu0 %v645_v23 }
 0x26a   : > { %v1052_v25 = vpop.f32.mrb[4].mxu0 }
 0x26b   : > { %v1053_v27 = vpop.f32.mrb[5].mxu0 }
 0x26c   : > { %v1054_v28 = vadd.f32 %v1053_v27, %v1052_v25  ;;  %v1055_v29 = vpop.f32.mrb[6].mxu0  ;;  %825 = sbr.rel (%p1028_p3) target bundleno = 635 (0x27b), region = 56 }
 0x26d   : > { %v1056_v31 = vpop.f32.mrb[7].mxu0 }
 0x26e   : > { %v818_v32 = vadd.f32 %v1054_v28, %v647_v26  ;;  %v1057_v33 = vadd.f32 %v1056_v31, %v1055_v29 }
 0x270   : > { %820 = vst [vmem:[#allocation2] sm:$0xff] %v818_v32  ;;  %v819_v34 = vadd.f32 %v1057_v33, %v648_v30 }
 0x272   : > { %821 = vst [vmem:[#allocation2 + $0x8] sm:$0xff] %v819_v34 }
 0x277   : > { %v826_v35 = vld [vmem:[#allocation2] sm:$0xff] }
 0x278   : > { %828 = vst [vmem:[#allocation9] sm:$0xff] %v826_v35 }
 0x279   : > { %v827_v36 = vld [vmem:[#allocation2 + $0x8] sm:$0xff] }
 0x27a   : > { %829 = vst [vmem:[#allocation9 + $0x8] sm:$0xff] %v827_v36 }
 0x27b PF: > { %p1079_p7 = scmp.eq.s32.totalorder %s1463_s21, 1  ;;  %s1406_s15 = smov [#allocation9]  }
 0x27c   : > { %s839_s12 = sshll.u32 %s1406_s15, 4  ;;  %s840_s12 = int_to_ptr.vmem [resolvable:$true] %s839_s12 }
 0x27d   : > { %s1310_s8 = scalar_lea.vmem %s840_s12, 256  ;;  %p1317_p6 = scmp.lt.s32.totalorder %s840_s12, %s840_s12 }
 0x27e   : > { %p1311_p10 = scmp.ne.s32.totalorder %s840_s12, %s1310_s8  ;;  %p1318_p8 = scmp.lt.s32.totalorder %s1310_s8, %s1310_s8 }
 0x280   : > { %p1312_p1 = pnand %p1311_p10, %p1079_p7  ;;  %p1319_p11 = por %p1318_p8, %p1317_p6 }
 0x282   : > { %p1313_p4 = pneg %p1312_p1 }
 0x284   : > { %p1320_p5 = pnand %p1319_p11, %p1313_p4 }
 0x286   : > { %1323 = shalt.err (!%p1320_p5)
}
 0x287   : > { %s1324_s23 = scalar_lea.hbm %s1736_s4, 256 }
 0x288   : > { %p1325_p0 = scmp.ne.s32.totalorder %s1736_s4, %s1324_s23  ;;  %p1330_p12 = scmp.lt.u32.totalorder %s1324_s23, %s1736_s4 }
 0x28a   : > { %p1326_p2 = pnand %p1325_p0, %p1079_p7 }
 0x28c   : > { %p1327_p13 = pneg %p1326_p2 }
 0x28e   : > { %p1332_p9 = pnand %p1330_p12, %p1327_p13 }
 0x290   : > { %1335 = shalt.err (!%p1332_p9)
}
 0x291   : > { %s1407_s13 = smov 128   ;;  %s1408_s6 = smov 8  }
 0x292   : > { %1065 = dma.vmem_to_hbm [thread:$0]  (%p1079_p7), %s840_s12, 256, %s1736_s4, [#allocation5], %s1407_s13, %s1407_s13, %s1408_s6  }
 0x293   : > { %1369 = dma.done.wait (%p1079_p7), [#allocation5], 256  }
 0x294   : > { %1371 = vsyncadd (%p1079_p7), [#allocation5], 4294967040 }
 0x295 PF: > { %s21_s20 = sadd.s32 1, %s1394_s20   ;;  %s1754_s15 = smov %s1378_s16 }
 0x296   : > { %p18_p3 = scmp.ge.s32.totalorder %s21_s20, 4   ;;  %s1755_s16 = smov %s1382_s17 }
 0x297   : > { %s1756_s17 = smov %s1482_s26  ;;  %s1757_s18 = smov %s1390_s19 }
 0x298   : > { %s1758_s19 = smov %s1760_s22  ;;  %20 = sbr.rel (!%p18_p3) target bundleno = 9 (0x9), region = 109 }
 0x29f   :  { %855 = vsyncpa [#allocation4], 1 }
 0x2a0   :  { %857 = vsyncpa [#allocation4 + $0x1], 1 }
 0x2a1   :  { %858 = vsyncpa [#allocation7], 1 }
 0x2a2   :  { %860 = vsyncpa [#allocation7 + $0x1], 1 }
 0x2a3   :  { %861 = vsyncpa [#allocation5], 1 }
 0x2a4   :  { %863 = vsyncpa [#allocation5 + $0x1], 1 }

</bundles_post_ra>
